<compile_context>
chip_gen: v7x
topology: tpu7x:2x2x1
jax: 0.10.0
libtpu: 0.0.40
codegen_flags: <defaults>
</compile_context>

<pallas_src>
import jax
import jax.numpy as jnp
from jax.experimental import pallas as pl
from jax.experimental.pallas import tpu as pltpu

_LANE = 128  # TPU vreg lane width; last dim is kept a multiple of this.


def _logexp_kernel(x_ref, o_ref):
    # forward of MyLogExp: h = log(exp(x))
    o_ref[...] = jnp.log(jnp.exp(x_ref[...]))


def my_log_exp_model(x: jax.Array) -> jax.Array:
    """Pallas implementation of MyLogExpModel.forward (elementwise log(exp(x)))."""
    orig_shape = x.shape
    total = x.size

    # Flatten and pad (if necessary) so the last dim is exactly 128 lanes.
    flat = x.reshape(total)
    padded_total = pl.cdiv(total, _LANE) * _LANE
    if padded_total != total:
        flat = jnp.pad(flat, (0, padded_total - total))
    rows = padded_total // _LANE
    x2d = flat.reshape(rows, _LANE)

    # Single full-array block resident in VMEM: no grid, no pipelining
    # bookkeeping. Full-array blocks are exempt from the (8,128) divisibility
    # rule, and ~437 KB fits comfortably in VMEM on every TPU generation.
    out2d = pl.pallas_call(
        _logexp_kernel,
        out_shape=jax.ShapeDtypeStruct((rows, _LANE), x.dtype),
        in_specs=[pl.BlockSpec(memory_space=pltpu.MemorySpace.VMEM)],
        out_specs=pl.BlockSpec(memory_space=pltpu.MemorySpace.VMEM),
    )(x2d)

    out = out2d.reshape(padded_total)
    if padded_total != total:
        out = out[:total]
    return out.reshape(orig_shape)


if __name__ == "__main__":
    key = jax.random.PRNGKey(0)
    # Same shape as the PyTorch reference input torch.rand((1, 2, 224, 244))
    x = jax.random.uniform(key, (1, 2, 224, 244), dtype=jnp.float32)

    out = my_log_exp_model(x)
    out = jax.block_until_ready(out)

    # Sanity check against the pure-JAX reference (same exp/log round trip).
    ref = jnp.log(jnp.exp(x))
    assert out.shape == x.shape and out.dtype == x.dtype
    assert jnp.allclose(out, ref, atol=1e-6), "mismatch vs reference"

    # TODO(synk): custom backward (grad_output * result) not implemented; only
    # the forward pass of MyLogExpModel is required here.
    print("KERNEL_OK")
</pallas_src>

<mosaic_0001>
module attributes {stable_mosaic.version = 11 : i64} {
  func.func @_logexp_kernel(%arg0: memref<854x128xf32, #tpu.memory_space<vmem>>, %arg1: memref<854x128xf32, #tpu.memory_space<vmem>>) attributes {dimension_semantics = [], scalar_prefetch = 0 : i64, scratch_operands = 0 : i64, tpu.core_type = #tpu.core_type<tc>} {
    %c0 = arith.constant 0 : index
    %c0_0 = arith.constant 0 : index
    %0 = vector.load %arg0[%c0, %c0_0] : memref<854x128xf32, #tpu.memory_space<vmem>>, vector<854x128xf32>
    %1 = math.exp %0 : vector<854x128xf32>
    %2 = math.log %1 : vector<854x128xf32>
    %c0_1 = arith.constant 0 : index
    %c0_2 = arith.constant 0 : index
    %3 = vector.load %arg1[%c0_1, %c0_2] : memref<854x128xf32, #tpu.memory_space<vmem>>, vector<854x128xf32>
    tpu.vector_store %arg1[%c0_1, %c0_2], %2 {strides = array<i32>} : memref<854x128xf32, #tpu.memory_space<vmem>>, vector<854x128xf32>,
    return
  }
}

</mosaic_0001>

<bundles_post_ra>
// kernel: tpu_custom_call.1
= control target key start
LH: loop header
LB: loop body
LE: loop exit
PB: predicated region body
PF: predicated region fallthrough
CT: control target
= control target key end

     0   :  { %6 = vsyncpa [#allocation3], 0  ;;  %s1206_s0 = inlined_call_operand.hbm [shape: f32[854,128], index: 0, kind: input, shape index: {}]   ;;  %s1207_s1 = inlined_call_operand.hbm [shape: f32[854,128], index: 1, kind: output, shape index: {}]  }
   0x1   :  { %7 = vsyncpa [#allocation4], 0  ;;  %s1162_s6 = smov [#allocation2]   ;;  %s1114_s10 = scalar_lea.hbm %s1206_s0, 13696 }
   0x2   :  { %s13_s7 = sshll.u32 %s1162_s6, 4  ;;  %p1115_p0 = scmp.ne.s32.totalorder %s1206_s0, %s1114_s10  ;;  %s14_s7 = int_to_ptr.vmem [resolvable:$true] %s13_s7 }
   0x3   :  { %p1118_p1 = scmp.lt.u32.totalorder %s1114_s10, %s1206_s0 }
   0x5   :  { %p1120_p2 = pnand %p1118_p1, %p1115_p0 }
   0x7   :  { %1123 = shalt.err (!%p1120_p2)
}
   0x8   :  { %s1124_s15 = scalar_lea.vmem %s14_s7, 13696  ;;  %p1129_p4 = scmp.lt.s32.totalorder %s14_s7, %s14_s7 }
   0x9   :  { %p1125_p3 = scmp.ne.s32.totalorder %s14_s7, %s1124_s15  ;;  %p1130_p5 = scmp.lt.s32.totalorder %s1124_s15, %s1124_s15 }
   0xb   :  { %p1131_p6 = por %p1130_p5, %p1129_p4 }
   0xd   :  { %p1132_p7 = pnand %p1131_p6, %p1125_p3 }
   0xf   :  { %1135 = shalt.err (!%p1132_p7)
}
  0x10   :  { %s1163_s16 = smov 128   ;;  %s1164_s17 = smov 8  }
  0x11   :  { %19 = dma.hbm_to_vmem [thread:$0]  %s1206_s0, 13696, %s14_s7, [#allocation3], %s1163_s16, %s1163_s16, %s1164_s17  }
  0x12   :  { %1158 = dma.done.wait [#allocation3], 13696  }
  0x13   :  { %1159 = vsyncadd [#allocation3], 4294953600  ;;  %v23_v0 = vld [vmem:[#allocation2] sm:$0xff]  ;;  %v24_v1 = vld [vmem:[#allocation2 + $0x8] sm:$0xff]  ;;  %s1165_s0 = smov [#allocation5]  }
  0x14   :  { %v25_v2 = vld [vmem:[#allocation2 + $0x10] sm:$0xff]  ;;  %v130_v3 = vmul.f32 1.442695, %v23_v0  ;;  %v132_v4 = vmul.f32 1.442695, %v24_v1  ;;  %v26_v6 = vld [vmem:[#allocation2 + $0x18] sm:$0xff] }
  0x15   :  { %v134_v5 = vmul.f32 1.442695, %v25_v2  ;;  %v27_v7 = vld [vmem:[#allocation2 + $0x20] sm:$0xff]  ;;  %v28_v8 = vld [vmem:[#allocation2 + $0x28] sm:$0xff]  ;;  %v136_v9 = vmul.f32 1.442695, %v26_v6 }
  0x16   :  { %686 = vpow2.f32 %v130_v3  ;;  %v138_v10 = vmul.f32 1.442695, %v27_v7  ;;  %v140_v11 = vmul.f32 1.442695, %v28_v8  ;;  %v29_v12 = vld [vmem:[#allocation2 + $0x30] sm:$0xff]  ;;  %v30_v13 = vld [vmem:[#allocation2 + $0x38] sm:$0xff] }
  0x17   :  { %688 = vpow2.f32 %v132_v4  ;;  %v31_v14 = vld [vmem:[#allocation2 + $0x40] sm:$0xff]  ;;  %v142_v15 = vmul.f32 1.442695, %v29_v12  ;;  %v144_v16 = vmul.f32 1.442695, %v30_v13  ;;  %v32_v17 = vld [vmem:[#allocation2 + $0x48] sm:$0xff] }
  0x18   :  { %690 = vpow2.f32 %v134_v5  ;;  %v33_v18 = vld [vmem:[#allocation2 + $0x50] sm:$0xff]  ;;  %v146_v19 = vmul.f32 1.442695, %v31_v14  ;;  %v148_v20 = vmul.f32 1.442695, %v32_v17  ;;  %v34_v28 = vld [vmem:[#allocation2 + $0x58] sm:$0xff] }
  0x19   :  { %692 = vpow2.f32 %v136_v9  ;;  %v150_v21 = vmul.f32 1.442695, %v33_v18  ;;  %v35_v30 = vld [vmem:[#allocation2 + $0x60] sm:$0xff]  ;;  %v36_v32 = vld [vmem:[#allocation2 + $0x68] sm:$0xff]  ;;  %v152_v34 = vmul.f32 1.442695, %v34_v28 }
  0x1a   :  { %694 = vpow2.f32 %v138_v10  ;;  %v37_v35 = vld [vmem:[#allocation2 + $0x70] sm:$0xff]  ;;  %v154_v37 = vmul.f32 1.442695, %v35_v30  ;;  %v38_v38 = vld [vmem:[#allocation2 + $0x78] sm:$0xff]  ;;  %v156_v40 = vmul.f32 1.442695, %v36_v32 }
  0x1b   :  { %696 = vpow2.f32 %v140_v11  ;;  %v39_v41 = vld [vmem:[#allocation2 + $0x80] sm:$0xff]  ;;  %v158_v43 = vmul.f32 1.442695, %v37_v35  ;;  %v40_v44 = vld [vmem:[#allocation2 + $0x88] sm:$0xff]  ;;  %v160_v47 = vmul.f32 1.442695, %v38_v38 }
  0x1c   :  { %698 = vpow2.f32 %v142_v15  ;;  %v41_v48 = vld [vmem:[#allocation2 + $0x90] sm:$0xff]  ;;  %v162_v51 = vmul.f32 1.442695, %v39_v41  ;;  %v42_v52 = vld [vmem:[#allocation2 + $0x98] sm:$0xff]  ;;  %v164_v55 = vmul.f32 1.442695, %v40_v44 }
  0x1d   :  { %700 = vpow2.f32 %v144_v16  ;;  %v43_v56 = vld [vmem:[#allocation2 + $0xa0] sm:$0xff]  ;;  %v166_v59 = vmul.f32 1.442695, %v41_v48  ;;  %v44_v60 = vld [vmem:[#allocation2 + $0xa8] sm:$0xff]  ;;  %v168_v63 = vmul.f32 1.442695, %v42_v52 }
  0x1e   :  { %702 = vpow2.f32 %v146_v19  ;;  %v170_v2 = vmul.f32 1.442695, %v43_v56  ;;  %v172_v5 = vmul.f32 1.442695, %v44_v60  ;;  %v45_v19 = vld [vmem:[#allocation2 + $0xb0] sm:$0xff]  ;;  %v50_v32 = vld [vmem:[#allocation2 + $0xd8] sm:$0xff] }
  0x1f   :  { %704 = vpow2.f32 %v148_v20  ;;  %v51_v35 = vld [vmem:[#allocation2 + $0xe0] sm:$0xff]  ;;  %s670_s20 = sshll.u32 %s1165_s0, 4  ;;  %s671_s20 = int_to_ptr.vmem [resolvable:$true] %s670_s20 }
  0x20   :  { %v687_v22 = vpop.eup %686  ;;  %706 = vpow2.f32 %v150_v21  ;;  %v46_v21 = vld [vmem:[#allocation2 + $0xb8] sm:$0xff]  ;;  %s1136_s21 = scalar_lea.vmem %s671_s20, 13696  ;;  %p1141_p9 = scmp.lt.s32.totalorder %s671_s20, %s671_s20 }
  0x21   :  { %v689_v23 = vpop.eup %688  ;;  %708 = vlog2.f32 %v687_v22  ;;  %v176_v28 = vmul.f32 1.442695, %v46_v21  ;;  %p1137_p8 = scmp.ne.s32.totalorder %s671_s20, %s1136_s21  ;;  %p1142_p10 = scmp.lt.s32.totalorder %s1136_s21, %s1136_s21 }
  0x22   :  { %v691_v24 = vpop.eup %690  ;;  %710 = vlog2.f32 %v689_v23  ;;  %v47_v23 = vld [vmem:[#allocation2 + $0xc0] sm:$0xff] }
  0x23   :  { %v693_v25 = vpop.eup %692  ;;  %712 = vlog2.f32 %v691_v24  ;;  %p1143_p11 = por %p1142_p10, %p1141_p9 }
  0x24   :  { %v695_v26 = vpop.eup %694  ;;  %714 = vlog2.f32 %v693_v25  ;;  %v174_v25 = vmul.f32 1.442695, %v45_v19 }
  0x25   :  { %v697_v27 = vpop.eup %696  ;;  %716 = vlog2.f32 %v695_v26  ;;  %v48_v26 = vld [vmem:[#allocation2 + $0xc8] sm:$0xff]  ;;  %p1144_p12 = pnand %p1143_p11, %p1137_p8 }
  0x26   :  { %v699_v29 = vpop.eup %698  ;;  %718 = vlog2.f32 %v697_v27 }
  0x27   :  { %v701_v31 = vpop.eup %700  ;;  %720 = vlog2.f32 %v699_v29  ;;  %v49_v29 = vld [vmem:[#allocation2 + $0xd0] sm:$0xff] }
  0x28   :  { %v703_v33 = vpop.eup %702  ;;  %722 = vlog2.f32 %v701_v31  ;;  %v178_v31 = vmul.f32 1.442695, %v47_v23  ;;  %v182_v38 = vmul.f32 1.442695, %v49_v29  ;;  %v61_v23 = vld [vmem:[#allocation2 + $0x130] sm:$0xff] }
  0x29   :  { %v705_v36 = vpop.eup %704  ;;  %724 = vlog2.f32 %v703_v33 }
  0x2a   :  { %v707_v39 = vpop.eup %706  ;;  %726 = vlog2.f32 %v705_v36 }
  0x2b   :  { %v709_v42 = vpop.eup %708  ;;  %728 = vlog2.f32 %v707_v39  ;;  %v52_v39 = vld [vmem:[#allocation2 + $0xe8] sm:$0xff] }
  0x2c   :  { %v711_v45 = vpop.eup %710  ;;  %v345_v46 = vmul.f32 0.6931472, %v709_v42  ;;  %730 = vpow2.f32 %v152_v34  ;;  %v180_v34 = vmul.f32 1.442695, %v48_v26  ;;  %v184_v42 = vmul.f32 1.442695, %v50_v32 }
  0x2d   :  { %v713_v49 = vpop.eup %712  ;;  %v347_v50 = vmul.f32 0.6931472, %v711_v45  ;;  %732 = vpow2.f32 %v154_v37  ;;  %v62_v26 = vld [vmem:[#allocation2 + $0x138] sm:$0xff] }
  0x2e   :  { %v715_v53 = vpop.eup %714  ;;  %558 = vst [vmem:[#allocation5] sm:$0xff] %v345_v46  ;;  %v349_v54 = vmul.f32 0.6931472, %v713_v49  ;;  %734 = vpow2.f32 %v156_v40  ;;  %v186_v46 = vmul.f32 1.442695, %v51_v35 }
  0x2f   :  { %v717_v57 = vpop.eup %716  ;;  %559 = vst [vmem:[#allocation5 + $0x8] sm:$0xff] %v347_v50  ;;  %v351_v58 = vmul.f32 0.6931472, %v715_v53  ;;  %736 = vpow2.f32 %v158_v43  ;;  %v53_v43 = vld [vmem:[#allocation2 + $0xf0] sm:$0xff]  ;;  %v188_v50 = vmul.f32 1.442695, %v52_v39 }
  0x30   :  { %v719_v61 = vpop.eup %718  ;;  %560 = vst [vmem:[#allocation5 + $0x10] sm:$0xff] %v349_v54  ;;  %v353_v62 = vmul.f32 0.6931472, %v717_v57  ;;  %738 = vpow2.f32 %v160_v47  ;;  %v54_v47 = vld [vmem:[#allocation2 + $0xf8] sm:$0xff]  ;;  %v190_v54 = vmul.f32 1.442695, %v53_v43 }
  0x31   :  { %v721_v0 = vpop.eup %720  ;;  %561 = vst [vmem:[#allocation5 + $0x18] sm:$0xff] %v351_v58  ;;  %v355_v1 = vmul.f32 0.6931472, %v719_v61  ;;  %740 = vpow2.f32 %v162_v51  ;;  %v55_v51 = vld [vmem:[#allocation2 + $0x100] sm:$0xff]  ;;  %v192_v57 = vmul.f32 1.442695, %v54_v47 }
  0x32   :  { %v723_v3 = vpop.eup %722  ;;  %562 = vst [vmem:[#allocation5 + $0x20] sm:$0xff] %v353_v62  ;;  %v357_v4 = vmul.f32 0.6931472, %v721_v0  ;;  %742 = vpow2.f32 %v164_v55  ;;  %v194_v60 = vmul.f32 1.442695, %v55_v51 }
  0x33   :  { %v725_v6 = vpop.eup %724  ;;  %563 = vst [vmem:[#allocation5 + $0x28] sm:$0xff] %v355_v1  ;;  %v359_v7 = vmul.f32 0.6931472, %v723_v3  ;;  %744 = vpow2.f32 %v166_v59 }
  0x34   :  { %v727_v8 = vpop.eup %726  ;;  %564 = vst [vmem:[#allocation5 + $0x30] sm:$0xff] %v357_v4  ;;  %v361_v9 = vmul.f32 0.6931472, %v725_v6  ;;  %746 = vpow2.f32 %v168_v63 }
  0x35   :  { %v729_v10 = vpop.eup %728  ;;  %565 = vst [vmem:[#allocation5 + $0x38] sm:$0xff] %v359_v7  ;;  %v363_v11 = vmul.f32 0.6931472, %v727_v8  ;;  %748 = vpow2.f32 %v170_v2 }
  0x36   :  { %v731_v12 = vpop.eup %730  ;;  %566 = vst [vmem:[#allocation5 + $0x40] sm:$0xff] %v361_v9  ;;  %v365_v13 = vmul.f32 0.6931472, %v729_v10  ;;  %750 = vpow2.f32 %v172_v5  ;;  %v56_v10 = vld [vmem:[#allocation2 + $0x108] sm:$0xff] }
  0x37   :  { %v733_v14 = vpop.eup %732  ;;  %567 = vst [vmem:[#allocation5 + $0x48] sm:$0xff] %v363_v11  ;;  %752 = vlog2.f32 %v731_v12  ;;  %v57_v12 = vld [vmem:[#allocation2 + $0x110] sm:$0xff] }
  0x38   :  { %v735_v15 = vpop.eup %734  ;;  %568 = vst [vmem:[#allocation5 + $0x50] sm:$0xff] %v365_v13  ;;  %754 = vlog2.f32 %v733_v14  ;;  %v58_v14 = vld [vmem:[#allocation2 + $0x118] sm:$0xff]  ;;  %v198_v19 = vmul.f32 1.442695, %v57_v12 }
  0x39   :  { %v737_v16 = vpop.eup %736  ;;  %756 = vlog2.f32 %v735_v15 }
  0x3a   :  { %v739_v17 = vpop.eup %738  ;;  %758 = vlog2.f32 %v737_v16  ;;  %v196_v16 = vmul.f32 1.442695, %v56_v10 }
  0x3b   :  { %v741_v18 = vpop.eup %740  ;;  %760 = vlog2.f32 %v739_v17  ;;  %v59_v17 = vld [vmem:[#allocation2 + $0x120] sm:$0xff] }
  0x3c   :  { %v743_v20 = vpop.eup %742  ;;  %762 = vlog2.f32 %v741_v18 }
  0x3d   :  { %v745_v22 = vpop.eup %744  ;;  %764 = vlog2.f32 %v743_v20  ;;  %v60_v20 = vld [vmem:[#allocation2 + $0x128] sm:$0xff] }
  0x3e   :  { %v747_v24 = vpop.eup %746  ;;  %766 = vlog2.f32 %v745_v22  ;;  %v200_v22 = vmul.f32 1.442695, %v58_v14  ;;  %v204_v29 = vmul.f32 1.442695, %v60_v20  ;;  %v72_v14 = vld [vmem:[#allocation2 + $0x188] sm:$0xff] }
  0x3f   :  { %v749_v27 = vpop.eup %748  ;;  %768 = vlog2.f32 %v747_v24 }
  0x40   :  { %v751_v30 = vpop.eup %750  ;;  %770 = vlog2.f32 %v749_v27 }
  0x41   :  { %v753_v33 = vpop.eup %752  ;;  %772 = vlog2.f32 %v751_v30  ;;  %v63_v30 = vld [vmem:[#allocation2 + $0x140] sm:$0xff] }
  0x42   :  { %v755_v36 = vpop.eup %754  ;;  %v367_v37 = vmul.f32 0.6931472, %v753_v33  ;;  %774 = vpow2.f32 %v174_v25  ;;  %v202_v25 = vmul.f32 1.442695, %v59_v17  ;;  %v206_v33 = vmul.f32 1.442695, %v61_v23 }
  0x43   :  { %v757_v40 = vpop.eup %756  ;;  %v369_v41 = vmul.f32 0.6931472, %v755_v36  ;;  %776 = vpow2.f32 %v176_v28  ;;  %v73_v17 = vld [vmem:[#allocation2 + $0x190] sm:$0xff] }
  0x44   :  { %v759_v44 = vpop.eup %758  ;;  %569 = vst [vmem:[#allocation5 + $0x58] sm:$0xff] %v367_v37  ;;  %v371_v45 = vmul.f32 0.6931472, %v757_v40  ;;  %778 = vpow2.f32 %v178_v31  ;;  %v208_v37 = vmul.f32 1.442695, %v62_v26 }
  0x45   :  { %v761_v48 = vpop.eup %760  ;;  %570 = vst [vmem:[#allocation5 + $0x60] sm:$0xff] %v369_v41  ;;  %v373_v49 = vmul.f32 0.6931472, %v759_v44  ;;  %780 = vpow2.f32 %v180_v34  ;;  %v64_v34 = vld [vmem:[#allocation2 + $0x148] sm:$0xff]  ;;  %v210_v41 = vmul.f32 1.442695, %v63_v30 }
  0x46   :  { %v763_v52 = vpop.eup %762  ;;  %571 = vst [vmem:[#allocation5 + $0x68] sm:$0xff] %v371_v45  ;;  %v375_v53 = vmul.f32 0.6931472, %v761_v48  ;;  %782 = vpow2.f32 %v182_v38  ;;  %v65_v38 = vld [vmem:[#allocation2 + $0x150] sm:$0xff]  ;;  %v212_v45 = vmul.f32 1.442695, %v64_v34 }
  0x47   :  { %v765_v55 = vpop.eup %764  ;;  %572 = vst [vmem:[#allocation5 + $0x70] sm:$0xff] %v373_v49  ;;  %v377_v56 = vmul.f32 0.6931472, %v763_v52  ;;  %784 = vpow2.f32 %v184_v42  ;;  %v66_v42 = vld [vmem:[#allocation2 + $0x158] sm:$0xff]  ;;  %v214_v48 = vmul.f32 1.442695, %v65_v38 }
  0x48   :  { %v767_v58 = vpop.eup %766  ;;  %573 = vst [vmem:[#allocation5 + $0x78] sm:$0xff] %v375_v53  ;;  %v379_v59 = vmul.f32 0.6931472, %v765_v55  ;;  %786 = vpow2.f32 %v186_v46  ;;  %v216_v51 = vmul.f32 1.442695, %v66_v42 }
  0x49   :  { %v769_v61 = vpop.eup %768  ;;  %574 = vst [vmem:[#allocation5 + $0x80] sm:$0xff] %v377_v56  ;;  %v381_v62 = vmul.f32 0.6931472, %v767_v58  ;;  %788 = vpow2.f32 %v188_v50 }
  0x4a   :  { %v771_v63 = vpop.eup %770  ;;  %575 = vst [vmem:[#allocation5 + $0x88] sm:$0xff] %v379_v59  ;;  %v383_v0 = vmul.f32 0.6931472, %v769_v61  ;;  %790 = vpow2.f32 %v190_v54 }
  0x4b   :  { %v773_v1 = vpop.eup %772  ;;  %576 = vst [vmem:[#allocation5 + $0x90] sm:$0xff] %v381_v62  ;;  %v385_v2 = vmul.f32 0.6931472, %v771_v63  ;;  %792 = vpow2.f32 %v192_v57 }
  0x4c   :  { %v775_v3 = vpop.eup %774  ;;  %577 = vst [vmem:[#allocation5 + $0x98] sm:$0xff] %v383_v0  ;;  %v387_v4 = vmul.f32 0.6931472, %v773_v1  ;;  %794 = vpow2.f32 %v194_v60  ;;  %v67_v1 = vld [vmem:[#allocation2 + $0x160] sm:$0xff] }
  0x4d   :  { %v777_v5 = vpop.eup %776  ;;  %578 = vst [vmem:[#allocation5 + $0xa0] sm:$0xff] %v385_v2  ;;  %796 = vlog2.f32 %v775_v3  ;;  %v68_v3 = vld [vmem:[#allocation2 + $0x168] sm:$0xff] }
  0x4e   :  { %v779_v6 = vpop.eup %778  ;;  %579 = vst [vmem:[#allocation5 + $0xa8] sm:$0xff] %v387_v4  ;;  %798 = vlog2.f32 %v777_v5  ;;  %v69_v5 = vld [vmem:[#allocation2 + $0x170] sm:$0xff]  ;;  %v220_v10 = vmul.f32 1.442695, %v68_v3 }
  0x4f   :  { %v781_v7 = vpop.eup %780  ;;  %800 = vlog2.f32 %v779_v6 }
  0x50   :  { %v783_v8 = vpop.eup %782  ;;  %802 = vlog2.f32 %v781_v7  ;;  %v218_v7 = vmul.f32 1.442695, %v67_v1 }
  0x51   :  { %v785_v9 = vpop.eup %784  ;;  %804 = vlog2.f32 %v783_v8  ;;  %v70_v8 = vld [vmem:[#allocation2 + $0x178] sm:$0xff] }
  0x52   :  { %v787_v11 = vpop.eup %786  ;;  %806 = vlog2.f32 %v785_v9 }
  0x53   :  { %v789_v13 = vpop.eup %788  ;;  %808 = vlog2.f32 %v787_v11  ;;  %v71_v11 = vld [vmem:[#allocation2 + $0x180] sm:$0xff] }
  0x54   :  { %v791_v15 = vpop.eup %790  ;;  %810 = vlog2.f32 %v789_v13  ;;  %v222_v13 = vmul.f32 1.442695, %v69_v5  ;;  %v226_v20 = vmul.f32 1.442695, %v71_v11  ;;  %v83_v5 = vld [vmem:[#allocation2 + $0x1e0] sm:$0xff] }
  0x55   :  { %v793_v18 = vpop.eup %792  ;;  %812 = vlog2.f32 %v791_v15 }
  0x56   :  { %v795_v21 = vpop.eup %794  ;;  %814 = vlog2.f32 %v793_v18 }
  0x57   :  { %v797_v24 = vpop.eup %796  ;;  %816 = vlog2.f32 %v795_v21  ;;  %v74_v21 = vld [vmem:[#allocation2 + $0x198] sm:$0xff] }
  0x58   :  { %v799_v27 = vpop.eup %798  ;;  %v389_v28 = vmul.f32 0.6931472, %v797_v24  ;;  %818 = vpow2.f32 %v196_v16  ;;  %v224_v16 = vmul.f32 1.442695, %v70_v8  ;;  %v228_v24 = vmul.f32 1.442695, %v72_v14 }
  0x59   :  { %v801_v31 = vpop.eup %800  ;;  %v391_v32 = vmul.f32 0.6931472, %v799_v27  ;;  %820 = vpow2.f32 %v198_v19  ;;  %v84_v8 = vld [vmem:[#allocation2 + $0x1e8] sm:$0xff] }
  0x5a   :  { %v803_v35 = vpop.eup %802  ;;  %580 = vst [vmem:[#allocation5 + $0xb0] sm:$0xff] %v389_v28  ;;  %v393_v36 = vmul.f32 0.6931472, %v801_v31  ;;  %822 = vpow2.f32 %v200_v22  ;;  %v230_v28 = vmul.f32 1.442695, %v73_v17 }
  0x5b   :  { %v805_v39 = vpop.eup %804  ;;  %581 = vst [vmem:[#allocation5 + $0xb8] sm:$0xff] %v391_v32  ;;  %v395_v40 = vmul.f32 0.6931472, %v803_v35  ;;  %824 = vpow2.f32 %v202_v25  ;;  %v75_v25 = vld [vmem:[#allocation2 + $0x1a0] sm:$0xff]  ;;  %v232_v32 = vmul.f32 1.442695, %v74_v21 }
  0x5c   :  { %v807_v43 = vpop.eup %806  ;;  %582 = vst [vmem:[#allocation5 + $0xc0] sm:$0xff] %v393_v36  ;;  %v397_v44 = vmul.f32 0.6931472, %v805_v39  ;;  %826 = vpow2.f32 %v204_v29  ;;  %v76_v29 = vld [vmem:[#allocation2 + $0x1a8] sm:$0xff]  ;;  %v234_v36 = vmul.f32 1.442695, %v75_v25 }
  0x5d   :  { %v809_v46 = vpop.eup %808  ;;  %583 = vst [vmem:[#allocation5 + $0xc8] sm:$0xff] %v395_v40  ;;  %v399_v47 = vmul.f32 0.6931472, %v807_v43  ;;  %828 = vpow2.f32 %v206_v33  ;;  %v77_v33 = vld [vmem:[#allocation2 + $0x1b0] sm:$0xff]  ;;  %v236_v39 = vmul.f32 1.442695, %v76_v29 }
  0x5e   :  { %v811_v49 = vpop.eup %810  ;;  %584 = vst [vmem:[#allocation5 + $0xd0] sm:$0xff] %v397_v44  ;;  %v401_v50 = vmul.f32 0.6931472, %v809_v46  ;;  %830 = vpow2.f32 %v208_v37  ;;  %v238_v42 = vmul.f32 1.442695, %v77_v33 }
  0x5f   :  { %v813_v52 = vpop.eup %812  ;;  %585 = vst [vmem:[#allocation5 + $0xd8] sm:$0xff] %v399_v47  ;;  %v403_v53 = vmul.f32 0.6931472, %v811_v49  ;;  %832 = vpow2.f32 %v210_v41 }
  0x60   :  { %v815_v54 = vpop.eup %814  ;;  %586 = vst [vmem:[#allocation5 + $0xe0] sm:$0xff] %v401_v50  ;;  %v405_v55 = vmul.f32 0.6931472, %v813_v52  ;;  %834 = vpow2.f32 %v212_v45 }
  0x61   :  { %v817_v56 = vpop.eup %816  ;;  %587 = vst [vmem:[#allocation5 + $0xe8] sm:$0xff] %v403_v53  ;;  %v407_v57 = vmul.f32 0.6931472, %v815_v54  ;;  %836 = vpow2.f32 %v214_v48 }
  0x62   :  { %v819_v58 = vpop.eup %818  ;;  %588 = vst [vmem:[#allocation5 + $0xf0] sm:$0xff] %v405_v55  ;;  %v409_v59 = vmul.f32 0.6931472, %v817_v56  ;;  %838 = vpow2.f32 %v216_v51  ;;  %v78_v56 = vld [vmem:[#allocation2 + $0x1b8] sm:$0xff] }
  0x63   :  { %v821_v60 = vpop.eup %820  ;;  %589 = vst [vmem:[#allocation5 + $0xf8] sm:$0xff] %v407_v57  ;;  %840 = vlog2.f32 %v819_v58  ;;  %v79_v58 = vld [vmem:[#allocation2 + $0x1c0] sm:$0xff] }
  0x64   :  { %v823_v61 = vpop.eup %822  ;;  %590 = vst [vmem:[#allocation5 + $0x100] sm:$0xff] %v409_v59  ;;  %842 = vlog2.f32 %v821_v60  ;;  %v80_v60 = vld [vmem:[#allocation2 + $0x1c8] sm:$0xff]  ;;  %v242_v1 = vmul.f32 1.442695, %v79_v58 }
  0x65   :  { %v825_v62 = vpop.eup %824  ;;  %844 = vlog2.f32 %v823_v61 }
  0x66   :  { %v827_v63 = vpop.eup %826  ;;  %846 = vlog2.f32 %v825_v62  ;;  %v240_v62 = vmul.f32 1.442695, %v78_v56 }
  0x67   :  { %v829_v0 = vpop.eup %828  ;;  %848 = vlog2.f32 %v827_v63  ;;  %v81_v63 = vld [vmem:[#allocation2 + $0x1d0] sm:$0xff] }
  0x68   :  { %v831_v2 = vpop.eup %830  ;;  %850 = vlog2.f32 %v829_v0 }
  0x69   :  { %v833_v4 = vpop.eup %832  ;;  %852 = vlog2.f32 %v831_v2  ;;  %v82_v2 = vld [vmem:[#allocation2 + $0x1d8] sm:$0xff] }
  0x6a   :  { %v835_v6 = vpop.eup %834  ;;  %854 = vlog2.f32 %v833_v4  ;;  %v244_v4 = vmul.f32 1.442695, %v80_v60  ;;  %v248_v11 = vmul.f32 1.442695, %v82_v2  ;;  %v94_v60 = vld [vmem:[#allocation2 + $0x238] sm:$0xff] }
  0x6b   :  { %v837_v9 = vpop.eup %836  ;;  %856 = vlog2.f32 %v835_v6 }
  0x6c   :  { %v839_v12 = vpop.eup %838  ;;  %858 = vlog2.f32 %v837_v9 }
  0x6d   :  { %v841_v15 = vpop.eup %840  ;;  %860 = vlog2.f32 %v839_v12  ;;  %v85_v12 = vld [vmem:[#allocation2 + $0x1f0] sm:$0xff] }
  0x6e   :  { %v843_v18 = vpop.eup %842  ;;  %v411_v19 = vmul.f32 0.6931472, %v841_v15  ;;  %862 = vpow2.f32 %v218_v7  ;;  %v246_v7 = vmul.f32 1.442695, %v81_v63  ;;  %v250_v15 = vmul.f32 1.442695, %v83_v5 }
  0x6f   :  { %v845_v22 = vpop.eup %844  ;;  %v413_v23 = vmul.f32 0.6931472, %v843_v18  ;;  %864 = vpow2.f32 %v220_v10  ;;  %v95_v63 = vld [vmem:[#allocation2 + $0x240] sm:$0xff] }
  0x70   :  { %v847_v26 = vpop.eup %846  ;;  %591 = vst [vmem:[#allocation5 + $0x108] sm:$0xff] %v411_v19  ;;  %v415_v27 = vmul.f32 0.6931472, %v845_v22  ;;  %866 = vpow2.f32 %v222_v13  ;;  %v252_v19 = vmul.f32 1.442695, %v84_v8 }
  0x71   :  { %v849_v30 = vpop.eup %848  ;;  %592 = vst [vmem:[#allocation5 + $0x110] sm:$0xff] %v413_v23  ;;  %v417_v31 = vmul.f32 0.6931472, %v847_v26  ;;  %868 = vpow2.f32 %v224_v16  ;;  %v86_v16 = vld [vmem:[#allocation2 + $0x1f8] sm:$0xff]  ;;  %v254_v23 = vmul.f32 1.442695, %v85_v12 }
  0x72   :  { %v851_v34 = vpop.eup %850  ;;  %593 = vst [vmem:[#allocation5 + $0x118] sm:$0xff] %v415_v27  ;;  %v419_v35 = vmul.f32 0.6931472, %v849_v30  ;;  %870 = vpow2.f32 %v226_v20  ;;  %v87_v20 = vld [vmem:[#allocation2 + $0x200] sm:$0xff]  ;;  %v256_v27 = vmul.f32 1.442695, %v86_v16 }
  0x73   :  { %v853_v37 = vpop.eup %852  ;;  %594 = vst [vmem:[#allocation5 + $0x120] sm:$0xff] %v417_v31  ;;  %v421_v38 = vmul.f32 0.6931472, %v851_v34  ;;  %872 = vpow2.f32 %v228_v24  ;;  %v88_v24 = vld [vmem:[#allocation2 + $0x208] sm:$0xff]  ;;  %v258_v30 = vmul.f32 1.442695, %v87_v20 }
  0x74   :  { %v855_v40 = vpop.eup %854  ;;  %595 = vst [vmem:[#allocation5 + $0x128] sm:$0xff] %v419_v35  ;;  %v423_v41 = vmul.f32 0.6931472, %v853_v37  ;;  %874 = vpow2.f32 %v230_v28  ;;  %v260_v33 = vmul.f32 1.442695, %v88_v24 }
  0x75   :  { %v857_v43 = vpop.eup %856  ;;  %596 = vst [vmem:[#allocation5 + $0x130] sm:$0xff] %v421_v38  ;;  %v425_v44 = vmul.f32 0.6931472, %v855_v40  ;;  %876 = vpow2.f32 %v232_v32 }
  0x76   :  { %v859_v45 = vpop.eup %858  ;;  %597 = vst [vmem:[#allocation5 + $0x138] sm:$0xff] %v423_v41  ;;  %v427_v46 = vmul.f32 0.6931472, %v857_v43  ;;  %878 = vpow2.f32 %v234_v36 }
  0x77   :  { %v861_v47 = vpop.eup %860  ;;  %598 = vst [vmem:[#allocation5 + $0x140] sm:$0xff] %v425_v44  ;;  %v429_v48 = vmul.f32 0.6931472, %v859_v45  ;;  %880 = vpow2.f32 %v236_v39 }
  0x78   :  { %v863_v49 = vpop.eup %862  ;;  %599 = vst [vmem:[#allocation5 + $0x148] sm:$0xff] %v427_v46  ;;  %v431_v50 = vmul.f32 0.6931472, %v861_v47  ;;  %882 = vpow2.f32 %v238_v42  ;;  %v89_v47 = vld [vmem:[#allocation2 + $0x210] sm:$0xff] }
  0x79   :  { %v865_v51 = vpop.eup %864  ;;  %600 = vst [vmem:[#allocation5 + $0x150] sm:$0xff] %v429_v48  ;;  %884 = vlog2.f32 %v863_v49  ;;  %v90_v49 = vld [vmem:[#allocation2 + $0x218] sm:$0xff] }
  0x7a   :  { %v867_v52 = vpop.eup %866  ;;  %601 = vst [vmem:[#allocation5 + $0x158] sm:$0xff] %v431_v50  ;;  %886 = vlog2.f32 %v865_v51  ;;  %v91_v51 = vld [vmem:[#allocation2 + $0x220] sm:$0xff]  ;;  %v264_v56 = vmul.f32 1.442695, %v90_v49 }
  0x7b   :  { %v869_v53 = vpop.eup %868  ;;  %888 = vlog2.f32 %v867_v52 }
  0x7c   :  { %v871_v54 = vpop.eup %870  ;;  %890 = vlog2.f32 %v869_v53  ;;  %v262_v53 = vmul.f32 1.442695, %v89_v47 }
  0x7d   :  { %v873_v55 = vpop.eup %872  ;;  %892 = vlog2.f32 %v871_v54  ;;  %v92_v54 = vld [vmem:[#allocation2 + $0x228] sm:$0xff] }
  0x7e   :  { %v875_v57 = vpop.eup %874  ;;  %894 = vlog2.f32 %v873_v55 }
  0x7f   :  { %v877_v59 = vpop.eup %876  ;;  %896 = vlog2.f32 %v875_v57  ;;  %v93_v57 = vld [vmem:[#allocation2 + $0x230] sm:$0xff] }
  0x80   :  { %v879_v61 = vpop.eup %878  ;;  %898 = vlog2.f32 %v877_v59  ;;  %v266_v59 = vmul.f32 1.442695, %v91_v51  ;;  %v270_v2 = vmul.f32 1.442695, %v93_v57  ;;  %v105_v51 = vld [vmem:[#allocation2 + $0x290] sm:$0xff] }
  0x81   :  { %v881_v0 = vpop.eup %880  ;;  %900 = vlog2.f32 %v879_v61 }
  0x82   :  { %v883_v3 = vpop.eup %882  ;;  %902 = vlog2.f32 %v881_v0 }
  0x83   :  { %v885_v6 = vpop.eup %884  ;;  %904 = vlog2.f32 %v883_v3  ;;  %v96_v3 = vld [vmem:[#allocation2 + $0x248] sm:$0xff] }
  0x84   :  { %v887_v9 = vpop.eup %886  ;;  %v433_v10 = vmul.f32 0.6931472, %v885_v6  ;;  %906 = vpow2.f32 %v240_v62  ;;  %v268_v62 = vmul.f32 1.442695, %v92_v54  ;;  %v272_v6 = vmul.f32 1.442695, %v94_v60 }
  0x85   :  { %v889_v13 = vpop.eup %888  ;;  %v435_v14 = vmul.f32 0.6931472, %v887_v9  ;;  %908 = vpow2.f32 %v242_v1  ;;  %v106_v54 = vld [vmem:[#allocation2 + $0x298] sm:$0xff] }
  0x86   :  { %v891_v17 = vpop.eup %890  ;;  %602 = vst [vmem:[#allocation5 + $0x160] sm:$0xff] %v433_v10  ;;  %v437_v18 = vmul.f32 0.6931472, %v889_v13  ;;  %910 = vpow2.f32 %v244_v4  ;;  %v274_v10 = vmul.f32 1.442695, %v95_v63 }
  0x87   :  { %v893_v21 = vpop.eup %892  ;;  %603 = vst [vmem:[#allocation5 + $0x168] sm:$0xff] %v435_v14  ;;  %v439_v22 = vmul.f32 0.6931472, %v891_v17  ;;  %912 = vpow2.f32 %v246_v7  ;;  %v97_v7 = vld [vmem:[#allocation2 + $0x250] sm:$0xff]  ;;  %v276_v14 = vmul.f32 1.442695, %v96_v3 }
  0x88   :  { %v895_v25 = vpop.eup %894  ;;  %604 = vst [vmem:[#allocation5 + $0x170] sm:$0xff] %v437_v18  ;;  %v441_v26 = vmul.f32 0.6931472, %v893_v21  ;;  %914 = vpow2.f32 %v248_v11  ;;  %v98_v11 = vld [vmem:[#allocation2 + $0x258] sm:$0xff]  ;;  %v278_v18 = vmul.f32 1.442695, %v97_v7 }
  0x89   :  { %v897_v28 = vpop.eup %896  ;;  %605 = vst [vmem:[#allocation5 + $0x178] sm:$0xff] %v439_v22  ;;  %v443_v29 = vmul.f32 0.6931472, %v895_v25  ;;  %916 = vpow2.f32 %v250_v15  ;;  %v99_v15 = vld [vmem:[#allocation2 + $0x260] sm:$0xff]  ;;  %v280_v21 = vmul.f32 1.442695, %v98_v11 }
  0x8a   :  { %v899_v31 = vpop.eup %898  ;;  %606 = vst [vmem:[#allocation5 + $0x180] sm:$0xff] %v441_v26  ;;  %v445_v32 = vmul.f32 0.6931472, %v897_v28  ;;  %918 = vpow2.f32 %v252_v19  ;;  %v282_v24 = vmul.f32 1.442695, %v99_v15 }
  0x8b   :  { %v901_v34 = vpop.eup %900  ;;  %607 = vst [vmem:[#allocation5 + $0x188] sm:$0xff] %v443_v29  ;;  %v447_v35 = vmul.f32 0.6931472, %v899_v31  ;;  %920 = vpow2.f32 %v254_v23 }
  0x8c   :  { %v903_v36 = vpop.eup %902  ;;  %608 = vst [vmem:[#allocation5 + $0x190] sm:$0xff] %v445_v32  ;;  %v449_v37 = vmul.f32 0.6931472, %v901_v34  ;;  %922 = vpow2.f32 %v256_v27 }
  0x8d   :  { %v905_v38 = vpop.eup %904  ;;  %609 = vst [vmem:[#allocation5 + $0x198] sm:$0xff] %v447_v35  ;;  %v451_v39 = vmul.f32 0.6931472, %v903_v36  ;;  %924 = vpow2.f32 %v258_v30 }
  0x8e   :  { %v907_v40 = vpop.eup %906  ;;  %610 = vst [vmem:[#allocation5 + $0x1a0] sm:$0xff] %v449_v37  ;;  %v453_v41 = vmul.f32 0.6931472, %v905_v38  ;;  %926 = vpow2.f32 %v260_v33  ;;  %v100_v38 = vld [vmem:[#allocation2 + $0x268] sm:$0xff] }
  0x8f   :  { %v909_v42 = vpop.eup %908  ;;  %611 = vst [vmem:[#allocation5 + $0x1a8] sm:$0xff] %v451_v39  ;;  %928 = vlog2.f32 %v907_v40  ;;  %v101_v40 = vld [vmem:[#allocation2 + $0x270] sm:$0xff] }
  0x90   :  { %v911_v43 = vpop.eup %910  ;;  %612 = vst [vmem:[#allocation5 + $0x1b0] sm:$0xff] %v453_v41  ;;  %930 = vlog2.f32 %v909_v42  ;;  %v102_v42 = vld [vmem:[#allocation2 + $0x278] sm:$0xff]  ;;  %v286_v47 = vmul.f32 1.442695, %v101_v40 }
  0x91   :  { %v913_v44 = vpop.eup %912  ;;  %932 = vlog2.f32 %v911_v43 }
  0x92   :  { %v915_v45 = vpop.eup %914  ;;  %934 = vlog2.f32 %v913_v44  ;;  %v284_v44 = vmul.f32 1.442695, %v100_v38 }
  0x93   :  { %v917_v46 = vpop.eup %916  ;;  %936 = vlog2.f32 %v915_v45  ;;  %v103_v45 = vld [vmem:[#allocation2 + $0x280] sm:$0xff] }
  0x94   :  { %v919_v48 = vpop.eup %918  ;;  %938 = vlog2.f32 %v917_v46 }
  0x95   :  { %v921_v50 = vpop.eup %920  ;;  %940 = vlog2.f32 %v919_v48  ;;  %v104_v48 = vld [vmem:[#allocation2 + $0x288] sm:$0xff] }
  0x96   :  { %v923_v52 = vpop.eup %922  ;;  %942 = vlog2.f32 %v921_v50  ;;  %v288_v50 = vmul.f32 1.442695, %v102_v42  ;;  %v292_v57 = vmul.f32 1.442695, %v104_v48  ;;  %v116_v42 = vld [vmem:[#allocation2 + $0x2e8] sm:$0xff] }
  0x97   :  { %v925_v55 = vpop.eup %924  ;;  %944 = vlog2.f32 %v923_v52 }
  0x98   :  { %v927_v58 = vpop.eup %926  ;;  %946 = vlog2.f32 %v925_v55 }
  0x99   :  { %v929_v61 = vpop.eup %928  ;;  %948 = vlog2.f32 %v927_v58  ;;  %v107_v58 = vld [vmem:[#allocation2 + $0x2a0] sm:$0xff] }
  0x9a   :  { %v931_v0 = vpop.eup %930  ;;  %v455_v1 = vmul.f32 0.6931472, %v929_v61  ;;  %950 = vpow2.f32 %v262_v53  ;;  %v290_v53 = vmul.f32 1.442695, %v103_v45  ;;  %v294_v61 = vmul.f32 1.442695, %v105_v51 }
  0x9b   :  { %v933_v4 = vpop.eup %932  ;;  %v457_v5 = vmul.f32 0.6931472, %v931_v0  ;;  %952 = vpow2.f32 %v264_v56  ;;  %v117_v45 = vld [vmem:[#allocation2 + $0x2f0] sm:$0xff] }
  0x9c   :  { %v935_v8 = vpop.eup %934  ;;  %613 = vst [vmem:[#allocation5 + $0x1b8] sm:$0xff] %v455_v1  ;;  %v459_v9 = vmul.f32 0.6931472, %v933_v4  ;;  %954 = vpow2.f32 %v266_v59  ;;  %v296_v1 = vmul.f32 1.442695, %v106_v54 }
  0x9d   :  { %v937_v12 = vpop.eup %936  ;;  %614 = vst [vmem:[#allocation5 + $0x1c0] sm:$0xff] %v457_v5  ;;  %v461_v13 = vmul.f32 0.6931472, %v935_v8  ;;  %956 = vpow2.f32 %v268_v62  ;;  %v108_v62 = vld [vmem:[#allocation2 + $0x2a8] sm:$0xff]  ;;  %v298_v5 = vmul.f32 1.442695, %v107_v58 }
  0x9e   :  { %v939_v16 = vpop.eup %938  ;;  %615 = vst [vmem:[#allocation5 + $0x1c8] sm:$0xff] %v459_v9  ;;  %v463_v17 = vmul.f32 0.6931472, %v937_v12  ;;  %958 = vpow2.f32 %v270_v2  ;;  %v109_v2 = vld [vmem:[#allocation2 + $0x2b0] sm:$0xff]  ;;  %v300_v9 = vmul.f32 1.442695, %v108_v62 }
  0x9f   :  { %v941_v19 = vpop.eup %940  ;;  %616 = vst [vmem:[#allocation5 + $0x1d0] sm:$0xff] %v461_v13  ;;  %v465_v20 = vmul.f32 0.6931472, %v939_v16  ;;  %960 = vpow2.f32 %v272_v6  ;;  %v110_v6 = vld [vmem:[#allocation2 + $0x2b8] sm:$0xff]  ;;  %v302_v12 = vmul.f32 1.442695, %v109_v2 }
  0xa0   :  { %v943_v22 = vpop.eup %942  ;;  %617 = vst [vmem:[#allocation5 + $0x1d8] sm:$0xff] %v463_v17  ;;  %v467_v23 = vmul.f32 0.6931472, %v941_v19  ;;  %962 = vpow2.f32 %v274_v10  ;;  %v304_v15 = vmul.f32 1.442695, %v110_v6 }
  0xa1   :  { %v945_v25 = vpop.eup %944  ;;  %618 = vst [vmem:[#allocation5 + $0x1e0] sm:$0xff] %v465_v20  ;;  %v469_v26 = vmul.f32 0.6931472, %v943_v22  ;;  %964 = vpow2.f32 %v276_v14 }
  0xa2   :  { %v947_v27 = vpop.eup %946  ;;  %619 = vst [vmem:[#allocation5 + $0x1e8] sm:$0xff] %v467_v23  ;;  %v471_v28 = vmul.f32 0.6931472, %v945_v25  ;;  %966 = vpow2.f32 %v278_v18 }
  0xa3   :  { %v949_v29 = vpop.eup %948  ;;  %620 = vst [vmem:[#allocation5 + $0x1f0] sm:$0xff] %v469_v26  ;;  %v473_v30 = vmul.f32 0.6931472, %v947_v27  ;;  %968 = vpow2.f32 %v280_v21 }
  0xa4   :  { %v951_v31 = vpop.eup %950  ;;  %621 = vst [vmem:[#allocation5 + $0x1f8] sm:$0xff] %v471_v28  ;;  %v475_v32 = vmul.f32 0.6931472, %v949_v29  ;;  %970 = vpow2.f32 %v282_v24  ;;  %v111_v29 = vld [vmem:[#allocation2 + $0x2c0] sm:$0xff] }
  0xa5   :  { %v953_v33 = vpop.eup %952  ;;  %622 = vst [vmem:[#allocation5 + $0x200] sm:$0xff] %v473_v30  ;;  %972 = vlog2.f32 %v951_v31  ;;  %v112_v31 = vld [vmem:[#allocation2 + $0x2c8] sm:$0xff] }
  0xa6   :  { %v955_v34 = vpop.eup %954  ;;  %623 = vst [vmem:[#allocation5 + $0x208] sm:$0xff] %v475_v32  ;;  %974 = vlog2.f32 %v953_v33  ;;  %v113_v33 = vld [vmem:[#allocation2 + $0x2d0] sm:$0xff]  ;;  %v308_v38 = vmul.f32 1.442695, %v112_v31 }
  0xa7   :  { %v957_v35 = vpop.eup %956  ;;  %976 = vlog2.f32 %v955_v34 }
  0xa8   :  { %v959_v36 = vpop.eup %958  ;;  %978 = vlog2.f32 %v957_v35  ;;  %v306_v35 = vmul.f32 1.442695, %v111_v29 }
  0xa9   :  { %v961_v37 = vpop.eup %960  ;;  %980 = vlog2.f32 %v959_v36  ;;  %v114_v36 = vld [vmem:[#allocation2 + $0x2d8] sm:$0xff] }
  0xaa   :  { %v963_v39 = vpop.eup %962  ;;  %982 = vlog2.f32 %v961_v37 }
  0xab   :  { %v965_v41 = vpop.eup %964  ;;  %984 = vlog2.f32 %v963_v39  ;;  %v115_v39 = vld [vmem:[#allocation2 + $0x2e0] sm:$0xff] }
  0xac   :  { %v967_v43 = vpop.eup %966  ;;  %986 = vlog2.f32 %v965_v41  ;;  %v310_v41 = vmul.f32 1.442695, %v113_v33  ;;  %v314_v48 = vmul.f32 1.442695, %v115_v39  ;;  %v127_v33 = vld [vmem:[#allocation2 + $0x340] sm:$0xff] }
  0xad   :  { %v969_v46 = vpop.eup %968  ;;  %988 = vlog2.f32 %v967_v43 }
  0xae   :  { %v971_v49 = vpop.eup %970  ;;  %990 = vlog2.f32 %v969_v46 }
  0xaf   :  { %v973_v52 = vpop.eup %972  ;;  %992 = vlog2.f32 %v971_v49  ;;  %v118_v49 = vld [vmem:[#allocation2 + $0x2f8] sm:$0xff] }
  0xb0   :  { %v975_v55 = vpop.eup %974  ;;  %v477_v56 = vmul.f32 0.6931472, %v973_v52  ;;  %994 = vpow2.f32 %v284_v44  ;;  %v312_v44 = vmul.f32 1.442695, %v114_v36  ;;  %v316_v52 = vmul.f32 1.442695, %v116_v42 }
  0xb1   :  { %v977_v59 = vpop.eup %976  ;;  %v479_v60 = vmul.f32 0.6931472, %v975_v55  ;;  %996 = vpow2.f32 %v286_v47  ;;  %v128_v36 = vld [vmem:[#allocation2 + $0x348] sm:$0xff] }
  0xb2   :  { %v979_v63 = vpop.eup %978  ;;  %624 = vst [vmem:[#allocation5 + $0x210] sm:$0xff] %v477_v56  ;;  %v481_v0 = vmul.f32 0.6931472, %v977_v59  ;;  %998 = vpow2.f32 %v288_v50  ;;  %v318_v56 = vmul.f32 1.442695, %v117_v45 }
  0xb3   :  { %v981_v3 = vpop.eup %980  ;;  %625 = vst [vmem:[#allocation5 + $0x218] sm:$0xff] %v479_v60  ;;  %v483_v4 = vmul.f32 0.6931472, %v979_v63  ;;  %1000 = vpow2.f32 %v290_v53  ;;  %v119_v53 = vld [vmem:[#allocation2 + $0x300] sm:$0xff]  ;;  %v320_v60 = vmul.f32 1.442695, %v118_v49 }
  0xb4   :  { %v983_v7 = vpop.eup %982  ;;  %626 = vst [vmem:[#allocation5 + $0x220] sm:$0xff] %v481_v0  ;;  %v485_v8 = vmul.f32 0.6931472, %v981_v3  ;;  %1002 = vpow2.f32 %v292_v57  ;;  %v120_v57 = vld [vmem:[#allocation2 + $0x308] sm:$0xff]  ;;  %v322_v0 = vmul.f32 1.442695, %v119_v53 }
  0xb5   :  { %v985_v10 = vpop.eup %984  ;;  %627 = vst [vmem:[#allocation5 + $0x228] sm:$0xff] %v483_v4  ;;  %v487_v11 = vmul.f32 0.6931472, %v983_v7  ;;  %1004 = vpow2.f32 %v294_v61  ;;  %v121_v61 = vld [vmem:[#allocation2 + $0x310] sm:$0xff]  ;;  %v324_v3 = vmul.f32 1.442695, %v120_v57 }
  0xb6   :  { %v987_v13 = vpop.eup %986  ;;  %628 = vst [vmem:[#allocation5 + $0x230] sm:$0xff] %v485_v8  ;;  %v489_v14 = vmul.f32 0.6931472, %v985_v10  ;;  %1006 = vpow2.f32 %v296_v1  ;;  %v326_v6 = vmul.f32 1.442695, %v121_v61 }
  0xb7   :  { %v989_v16 = vpop.eup %988  ;;  %629 = vst [vmem:[#allocation5 + $0x238] sm:$0xff] %v487_v11  ;;  %v491_v17 = vmul.f32 0.6931472, %v987_v13  ;;  %1008 = vpow2.f32 %v298_v5 }
  0xb8   :  { %v991_v18 = vpop.eup %990  ;;  %630 = vst [vmem:[#allocation5 + $0x240] sm:$0xff] %v489_v14  ;;  %v493_v19 = vmul.f32 0.6931472, %v989_v16  ;;  %1010 = vpow2.f32 %v300_v9 }
  0xb9   :  { %v993_v20 = vpop.eup %992  ;;  %631 = vst [vmem:[#allocation5 + $0x248] sm:$0xff] %v491_v17  ;;  %v495_v21 = vmul.f32 0.6931472, %v991_v18  ;;  %1012 = vpow2.f32 %v302_v12 }
  0xba   :  { %v995_v22 = vpop.eup %994  ;;  %632 = vst [vmem:[#allocation5 + $0x250] sm:$0xff] %v493_v19  ;;  %v497_v23 = vmul.f32 0.6931472, %v993_v20  ;;  %1014 = vpow2.f32 %v304_v15  ;;  %v122_v20 = vld [vmem:[#allocation2 + $0x318] sm:$0xff] }
  0xbb   :  { %v997_v24 = vpop.eup %996  ;;  %633 = vst [vmem:[#allocation5 + $0x258] sm:$0xff] %v495_v21  ;;  %1016 = vlog2.f32 %v995_v22  ;;  %v123_v22 = vld [vmem:[#allocation2 + $0x320] sm:$0xff] }
  0xbc   :  { %v999_v25 = vpop.eup %998  ;;  %634 = vst [vmem:[#allocation5 + $0x260] sm:$0xff] %v497_v23  ;;  %1018 = vlog2.f32 %v997_v24  ;;  %v124_v24 = vld [vmem:[#allocation2 + $0x328] sm:$0xff]  ;;  %v330_v29 = vmul.f32 1.442695, %v123_v22 }
  0xbd   :  { %v1001_v26 = vpop.eup %1000  ;;  %1020 = vlog2.f32 %v999_v25 }
  0xbe   :  { %v1003_v27 = vpop.eup %1002  ;;  %1022 = vlog2.f32 %v1001_v26  ;;  %v328_v26 = vmul.f32 1.442695, %v122_v20 }
  0xbf   :  { %v1005_v28 = vpop.eup %1004  ;;  %1024 = vlog2.f32 %v1003_v27  ;;  %v125_v27 = vld [vmem:[#allocation2 + $0x330] sm:$0xff] }
  0xc0   :  { %v1007_v30 = vpop.eup %1006  ;;  %1026 = vlog2.f32 %v1005_v28 }
  0xc1   :  { %v1009_v32 = vpop.eup %1008  ;;  %1028 = vlog2.f32 %v1007_v30  ;;  %v126_v30 = vld [vmem:[#allocation2 + $0x338] sm:$0xff] }
  0xc2   :  { %v1011_v34 = vpop.eup %1010  ;;  %1030 = vlog2.f32 %v1009_v32  ;;  %v332_v32 = vmul.f32 1.442695, %v124_v24  ;;  %v336_v39 = vmul.f32 1.442695, %v126_v30 }
  0xc3   :  { %v1013_v37 = vpop.eup %1012  ;;  %1032 = vlog2.f32 %v1011_v34 }
  0xc4   :  { %v1015_v40 = vpop.eup %1014  ;;  %1034 = vlog2.f32 %v1013_v37 }
  0xc5   :  { %v1017_v43 = vpop.eup %1016  ;;  %1036 = vlog2.f32 %v1015_v40  ;;  %v129_v40 = vld [vmem:[#allocation2 + $0x350] sm:$0x3f] }
  0xc6   :  { %v1019_v46 = vpop.eup %1018  ;;  %v499_v47 = vmul.f32 0.6931472, %v1017_v43  ;;  %1038 = vpow2.f32 %v306_v35  ;;  %v334_v35 = vmul.f32 1.442695, %v125_v27  ;;  %v338_v43 = vmul.f32 1.442695, %v127_v33 }
  0xc7   :  { %v1021_v50 = vpop.eup %1020  ;;  %v501_v51 = vmul.f32 0.6931472, %v1019_v46  ;;  %1040 = vpow2.f32 %v308_v38  ;;  %v340_v46 = vmul.f32 1.442695, %v128_v36  ;;  %v342_v49 = vmul.f32 1.442695, %v129_v40 }
  0xc8   :  { %v1023_v54 = vpop.eup %1022  ;;  %635 = vst [vmem:[#allocation5 + $0x268] sm:$0xff] %v499_v47  ;;  %v503_v55 = vmul.f32 0.6931472, %v1021_v50  ;;  %1042 = vpow2.f32 %v310_v41 }
  0xc9   :  { %v1025_v58 = vpop.eup %1024  ;;  %636 = vst [vmem:[#allocation5 + $0x270] sm:$0xff] %v501_v51  ;;  %v505_v59 = vmul.f32 0.6931472, %v1023_v54  ;;  %1044 = vpow2.f32 %v312_v44 }
  0xca   :  { %v1027_v62 = vpop.eup %1026  ;;  %637 = vst [vmem:[#allocation5 + $0x278] sm:$0xff] %v503_v55  ;;  %v507_v63 = vmul.f32 0.6931472, %v1025_v58  ;;  %1046 = vpow2.f32 %v314_v48 }
  0xcb   :  { %v1029_v1 = vpop.eup %1028  ;;  %638 = vst [vmem:[#allocation5 + $0x280] sm:$0xff] %v505_v59  ;;  %v509_v2 = vmul.f32 0.6931472, %v1027_v62  ;;  %1048 = vpow2.f32 %v316_v52 }
  0xcc   :  { %v1031_v4 = vpop.eup %1030  ;;  %639 = vst [vmem:[#allocation5 + $0x288] sm:$0xff] %v507_v63  ;;  %v511_v5 = vmul.f32 0.6931472, %v1029_v1  ;;  %1050 = vpow2.f32 %v318_v56 }
  0xcd   :  { %v1033_v7 = vpop.eup %1032  ;;  %640 = vst [vmem:[#allocation5 + $0x290] sm:$0xff] %v509_v2  ;;  %v513_v8 = vmul.f32 0.6931472, %v1031_v4  ;;  %1052 = vpow2.f32 %v320_v60 }
  0xce   :  { %v1035_v9 = vpop.eup %1034  ;;  %641 = vst [vmem:[#allocation5 + $0x298] sm:$0xff] %v511_v5  ;;  %v515_v10 = vmul.f32 0.6931472, %v1033_v7  ;;  %1054 = vpow2.f32 %v322_v0 }
  0xcf   :  { %v1037_v11 = vpop.eup %1036  ;;  %642 = vst [vmem:[#allocation5 + $0x2a0] sm:$0xff] %v513_v8  ;;  %v517_v12 = vmul.f32 0.6931472, %v1035_v9  ;;  %1056 = vpow2.f32 %v324_v3 }
  0xd0   :  { %v1039_v13 = vpop.eup %1038  ;;  %643 = vst [vmem:[#allocation5 + $0x2a8] sm:$0xff] %v515_v10  ;;  %v519_v14 = vmul.f32 0.6931472, %v1037_v11  ;;  %1058 = vpow2.f32 %v326_v6 }
  0xd1   :  { %v1041_v15 = vpop.eup %1040  ;;  %644 = vst [vmem:[#allocation5 + $0x2b0] sm:$0xff] %v517_v12  ;;  %1060 = vlog2.f32 %v1039_v13 }
  0xd2   :  { %v1043_v16 = vpop.eup %1042  ;;  %645 = vst [vmem:[#allocation5 + $0x2b8] sm:$0xff] %v519_v14  ;;  %1062 = vlog2.f32 %v1041_v15 }
  0xd3   :  { %v1045_v17 = vpop.eup %1044  ;;  %1064 = vlog2.f32 %v1043_v16 }
  0xd4   :  { %v1047_v18 = vpop.eup %1046  ;;  %1066 = vlog2.f32 %v1045_v17 }
  0xd5   :  { %v1049_v19 = vpop.eup %1048  ;;  %1068 = vlog2.f32 %v1047_v18 }
  0xd6   :  { %v1051_v21 = vpop.eup %1050  ;;  %1070 = vlog2.f32 %v1049_v19 }
  0xd7   :  { %v1053_v23 = vpop.eup %1052  ;;  %1072 = vlog2.f32 %v1051_v21 }
  0xd8   :  { %v1055_v25 = vpop.eup %1054  ;;  %1074 = vlog2.f32 %v1053_v23 }
  0xd9   :  { %v1057_v28 = vpop.eup %1056  ;;  %1076 = vlog2.f32 %v1055_v25 }
  0xda   :  { %v1059_v31 = vpop.eup %1058  ;;  %1078 = vlog2.f32 %v1057_v28 }
  0xdb   :  { %v1061_v34 = vpop.eup %1060  ;;  %1080 = vlog2.f32 %v1059_v31 }
  0xdc   :  { %v1063_v37 = vpop.eup %1062  ;;  %v521_v38 = vmul.f32 0.6931472, %v1061_v34  ;;  %1082 = vpow2.f32 %v328_v26 }
  0xdd   :  { %v1065_v41 = vpop.eup %1064  ;;  %v523_v42 = vmul.f32 0.6931472, %v1063_v37  ;;  %1084 = vpow2.f32 %v330_v29 }
  0xde   :  { %v1067_v44 = vpop.eup %1066  ;;  %646 = vst [vmem:[#allocation5 + $0x2c0] sm:$0xff] %v521_v38  ;;  %v525_v45 = vmul.f32 0.6931472, %v1065_v41  ;;  %1086 = vpow2.f32 %v332_v32 }
  0xdf   :  { %v1069_v47 = vpop.eup %1068  ;;  %647 = vst [vmem:[#allocation5 + $0x2c8] sm:$0xff] %v523_v42  ;;  %v527_v48 = vmul.f32 0.6931472, %v1067_v44  ;;  %1088 = vpow2.f32 %v334_v35 }
  0xe0   :  { %v1071_v50 = vpop.eup %1070  ;;  %648 = vst [vmem:[#allocation5 + $0x2d0] sm:$0xff] %v525_v45  ;;  %v529_v51 = vmul.f32 0.6931472, %v1069_v47  ;;  %1090 = vpow2.f32 %v336_v39 }
  0xe1   :  { %v1073_v52 = vpop.eup %1072  ;;  %649 = vst [vmem:[#allocation5 + $0x2d8] sm:$0xff] %v527_v48  ;;  %v531_v53 = vmul.f32 0.6931472, %v1071_v50  ;;  %1092 = vpow2.f32 %v338_v43 }
  0xe2   :  { %v1075_v54 = vpop.eup %1074  ;;  %650 = vst [vmem:[#allocation5 + $0x2e0] sm:$0xff] %v529_v51  ;;  %v533_v55 = vmul.f32 0.6931472, %v1073_v52  ;;  %1094 = vpow2.f32 %v340_v46 }
  0xe3   :  { %v1077_v56 = vpop.eup %1076  ;;  %651 = vst [vmem:[#allocation5 + $0x2e8] sm:$0xff] %v531_v53  ;;  %v535_v57 = vmul.f32 0.6931472, %v1075_v54  ;;  %1096 = vpow2.f32 %v342_v49 }
  0xe4   :  { %v1079_v58 = vpop.eup %1078  ;;  %652 = vst [vmem:[#allocation5 + $0x2f0] sm:$0xff] %v533_v55  ;;  %v537_v59 = vmul.f32 0.6931472, %v1077_v56 }
  0xe5   :  { %v1081_v60 = vpop.eup %1080  ;;  %653 = vst [vmem:[#allocation5 + $0x2f8] sm:$0xff] %v535_v57  ;;  %v539_v61 = vmul.f32 0.6931472, %v1079_v58 }
  0xe6   :  { %v1083_v62 = vpop.eup %1082  ;;  %654 = vst [vmem:[#allocation5 + $0x300] sm:$0xff] %v537_v59  ;;  %v541_v63 = vmul.f32 0.6931472, %v1081_v60 }
  0xe7   :  { %v1085_v0 = vpop.eup %1084  ;;  %655 = vst [vmem:[#allocation5 + $0x308] sm:$0xff] %v539_v61  ;;  %1098 = vlog2.f32 %v1083_v62 }
  0xe8   :  { %v1087_v1 = vpop.eup %1086  ;;  %656 = vst [vmem:[#allocation5 + $0x310] sm:$0xff] %v541_v63  ;;  %1100 = vlog2.f32 %v1085_v0 }
  0xe9   :  { %v1089_v2 = vpop.eup %1088  ;;  %1102 = vlog2.f32 %v1087_v1 }
  0xea   :  { %v1091_v3 = vpop.eup %1090  ;;  %1104 = vlog2.f32 %v1089_v2 }
  0xeb   :  { %v1093_v4 = vpop.eup %1092  ;;  %1106 = vlog2.f32 %v1091_v3 }
  0xec   :  { %v1095_v5 = vpop.eup %1094  ;;  %1108 = vlog2.f32 %v1093_v4 }
  0xed   :  { %v1097_v6 = vpop.eup %1096  ;;  %1110 = vlog2.f32 %v1095_v5 }
  0xee   :  { %1112 = vlog2.f32 %v1097_v6 }
  0xf1   :  { %v1099_v7 = vpop.eup %1098 }
  0xf2   :  { %v1101_v8 = vpop.eup %1100  ;;  %v543_v9 = vmul.f32 0.6931472, %v1099_v7 }
  0xf3   :  { %v1103_v10 = vpop.eup %1102  ;;  %v545_v11 = vmul.f32 0.6931472, %v1101_v8 }
  0xf4   :  { %v1105_v12 = vpop.eup %1104  ;;  %657 = vst [vmem:[#allocation5 + $0x318] sm:$0xff] %v543_v9  ;;  %v547_v13 = vmul.f32 0.6931472, %v1103_v10 }
  0xf5   :  { %v1107_v14 = vpop.eup %1106  ;;  %658 = vst [vmem:[#allocation5 + $0x320] sm:$0xff] %v545_v11  ;;  %v549_v15 = vmul.f32 0.6931472, %v1105_v12 }
  0xf6   :  { %v1109_v16 = vpop.eup %1108  ;;  %659 = vst [vmem:[#allocation5 + $0x328] sm:$0xff] %v547_v13  ;;  %v551_v17 = vmul.f32 0.6931472, %v1107_v14 }
  0xf7   :  { %v1111_v18 = vpop.eup %1110  ;;  %660 = vst [vmem:[#allocation5 + $0x330] sm:$0xff] %v549_v15  ;;  %v553_v19 = vmul.f32 0.6931472, %v1109_v16 }
  0xf8   :  { %v1113_v20 = vpop.eup %1112  ;;  %661 = vst [vmem:[#allocation5 + $0x338] sm:$0xff] %v551_v17  ;;  %v555_v21 = vmul.f32 0.6931472, %v1111_v18 }
  0xf9   :  { %662 = vst [vmem:[#allocation5 + $0x340] sm:$0xff] %v553_v19  ;;  %v557_v22 = vmul.f32 0.6931472, %v1113_v20 }
  0xfa   :  { %663 = vst [vmem:[#allocation5 + $0x348] sm:$0xff] %v555_v21 }
  0xfb   :  { %664 = vst [vmem:[#allocation5 + $0x350] sm:$0x3f] %v557_v22 }
  0xfc   :  { %1147 = shalt.err (!%p1144_p12)
}
  0xfd   :  { %s1148_s24 = scalar_lea.hbm %s1207_s1, 13696 }
  0xfe   :  { %p1149_p13 = scmp.ne.s32.totalorder %s1207_s1, %s1148_s24  ;;  %p1152_p0 = scmp.lt.u32.totalorder %s1148_s24, %s1207_s1 }
 0x100   :  { %p1154_p1 = pnand %p1152_p0, %p1149_p13 }
 0x102   :  { %1157 = shalt.err (!%p1154_p1)
}
 0x103   :  { %676 = dma.vmem_to_hbm [thread:$0]  %s671_s20, 13696, %s1207_s1, [#allocation4], %s1163_s16, %s1163_s16, %s1164_s17  }
 0x104   :  { %1160 = dma.done.wait [#allocation4], 13696  }
 0x105   :  { %1161 = vsyncadd [#allocation4], 4294953600 }
 0x106   :  { %680 = vsyncpa [#allocation3], 1 }
 0x107   :  { %681 = vsyncpa [#allocation4], 1 }

</bundles_post_ra>
